<compile_context>
chip_gen: v6e
topology: v6e:2x2x1
jax: 0.10.0
libtpu: 0.0.40
codegen_flags: <defaults>
</compile_context>

<pallas_src>
import jax
import jax.numpy as jnp
from jax.experimental import pallas as pl
from jax.experimental.pallas import tpu as pltpu


def _round_up(n, m):
    return ((n + m - 1) // m) * m


def _round_down(n, m):
    return (n // m) * m


def linear_kernel(x_ref, w_ref, b_ref, o_ref):
    # x_ref: [TB, D] (VMEM, pipelined)   w_ref: [1, D]  (VMEM, resident)
    # b_ref: [1]     (SMEM scalar)       o_ref: [1, TB] (lane-dense out row)
    x = x_ref[...]                                  # [TB, D]
    w = w_ref[...]                                  # [1, D] lane-dense
    acc = jnp.sum(x * w, axis=-1, keepdims=True)    # [TB, 1] f32 lane reduce
    y = acc + b_ref[0]                              # scalar bias from SMEM
    o_ref[...] = y.T.astype(o_ref.dtype)            # XLU transpose -> [1, TB]


# ~8 MiB of f32 x-data per block: well past the ~85%-of-roofline knee on v6e
# and large enough that per-step overhead is negligible even at v7x's
# ~3.2 TB/s.  Double-buffered (2 blocks) this fits a 32 MiB scoped-VMEM
# budget, which every generation supports (v7x physical VMEM = 64 MiB).
_TARGET_BLOCK_BYTES = 8 * 1024 * 1024


def _choose_batch_tile(batch, in_dim):
    # Size the batch tile by bytes, rounded down to a lane-dense multiple of
    # 128 rows; floor at 128 rows.
    rows = _round_down(_TARGET_BLOCK_BYTES // (4 * in_dim), 128)
    rows = max(rows, 128)
    if batch <= rows:
        # Whole batch in a single block: only round the sublane dim up to 8.
        # (Tiny batches get a masked tail store on the output row, which is
        # negligible; batch >= 128 already gives a lane-dense output.)
        rows = max(8, _round_up(batch, 8))
    return rows


def _gemv_call(B, D, tb, num_tiles, out_cols, *, core_parallel):
    # Built lazily so pltpu.CORE_PARALLEL access / lowering issues are caught
    # by the caller's try/except and we can fall back to plain "parallel".
    sem = (pltpu.CORE_PARALLEL,) if core_parallel else ("parallel",)

    block_bytes = tb * D * 4
    # 2 double-buffered x blocks + weight + output rows, with headroom.
    # Stays <= 48 MiB so it is valid on every generation (v7x physical 64 MiB).
    vmem_limit = int(min(48 * 1024 * 1024,
                         max(32 * 1024 * 1024, 2 * block_bytes + (2 << 20))))
    # TODO(synk): for very large in_dim (x block > ~23 MiB at the 128-row
    # floor) a second grid axis over D with a VMEM accumulator is needed.

    return pl.pallas_call(
        linear_kernel,
        out_shape=jax.ShapeDtypeStruct((1, out_cols), jnp.float32),
        grid_spec=pltpu.PrefetchScalarGridSpec(
            num_scalar_prefetch=0,
            grid=(num_tiles,),
            in_specs=[
                pl.BlockSpec((tb, D), lambda i: (i, 0)),            # x tile
                pl.BlockSpec((1, D), lambda i: (0, 0)),             # weight (resident)
                pl.BlockSpec(memory_space=pltpu.MemorySpace.SMEM),  # bias scalar
            ],
            out_specs=pl.BlockSpec((1, tb), lambda i: (0, i)),      # lane-dense out
        ),
        compiler_params=pltpu.CompilerParams(
            dimension_semantics=sem,
            vmem_limit_bytes=vmem_limit),
        cost_estimate=pl.CostEstimate(
            flops=2 * B * D,
            transcendentals=0,
            bytes_accessed=(B * D + D + 1 + out_cols) * 4),
    )


def net_forward(x, weight, bias):
    """y = x @ weight.T + bias, equivalent to torch nn.Linear(in_dim, 1).

    x:      [B, in_dim]
    weight: [1, in_dim]  (PyTorch layout; kept lane-dense, never transposed)
    bias:   [1]
    returns [B, 1] float32
    """
    B, D = x.shape
    x = x.astype(jnp.float32)                      # pin f32 accumulate semantics
    w = weight.reshape(1, D).astype(jnp.float32)   # lane-dense [1, D]
    b = bias.reshape(1).astype(jnp.float32)

    tb = _choose_batch_tile(B, D)
    num_tiles = int(pl.cdiv(B, tb))
    out_cols = num_tiles * tb
    # No jnp.pad on x: when B % tb != 0 the last tile is a partial edge block
    # (Pallas clamps the DMA to the valid rows); its extra rows reduce
    # independently and their outputs are dropped by the [:B] slice below.

    try:
        # v7x: shard batch tiles across both TensorCores (each with its own
        # HBM path) -> ~2x for this mem-bound GEMV.  Degenerate no-op on
        # single-core v5e/v6e.
        out = _gemv_call(B, D, tb, num_tiles, out_cols,
                         core_parallel=True)(x, w, b)
    except Exception:
        out = _gemv_call(B, D, tb, num_tiles, out_cols,
                         core_parallel=False)(x, w, b)

    return out[0, :B].reshape(B, 1)


if __name__ == "__main__":
    B, IN_DIM = 8, 32

    key = jax.random.PRNGKey(0)
    kx, kw, kb = jax.random.split(key, 3)

    # Deterministic init mimicking nn.Linear's uniform(-1/sqrt(D), 1/sqrt(D)).
    bound = 1.0 / jnp.sqrt(jnp.float32(IN_DIM))
    x = jax.random.normal(kx, (B, IN_DIM), dtype=jnp.float32)
    weight = jax.random.uniform(kw, (1, IN_DIM), minval=-bound, maxval=bound,
                                dtype=jnp.float32)
    bias = jax.random.uniform(kb, (1,), minval=-bound, maxval=bound,
                              dtype=jnp.float32)

    y = net_forward(x, weight, bias)
    y = jax.block_until_ready(y)

    # Pure-JAX reference check.
    y_ref = x @ weight.T + bias
    assert y.shape == (B, 1)
    assert jnp.allclose(y, y_ref, atol=1e-5, rtol=1e-5)

    print("KERNEL_OK")
</pallas_src>

<mosaic_0001>
module attributes {stable_mosaic.version = 11 : i64} {
  func.func @linear_kernel(%arg0: i32, %arg1: memref<8x32xf32, #tpu.memory_space<vmem>>, %arg2: memref<1x32xf32, #tpu.memory_space<vmem>>, %arg3: memref<1xf32, #tpu.memory_space<smem>>, %arg4: memref<1x8xf32, #tpu.memory_space<vmem>>) attributes {dimension_semantics = [#tpu.dimension_semantics<core_parallel>], iteration_bounds = array<i64: 1>, scalar_prefetch = 0 : i64, scratch_operands = 0 : i64, tpu.core_type = #tpu.core_type<tc>, window_params = [{transform_indices = @transform_0, window_bounds = array<i64: 8, 32>}, {pipeline_mode = #tpu.pipeline_mode<synchronous>, transform_indices = @transform_1, window_bounds = array<i64: 1, 32>}, {transform_indices = @transform_2, window_bounds = array<i64: 1>}, {transform_indices = @transform_3, window_bounds = array<i64: 1, 8>}]} {
    %c0 = arith.constant 0 : index
    %c0_0 = arith.constant 0 : index
    %0 = vector.load %arg1[%c0, %c0_0] : memref<8x32xf32, #tpu.memory_space<vmem>>, vector<8x32xf32>
    %c0_1 = arith.constant 0 : index
    %c0_2 = arith.constant 0 : index
    %1 = vector.load %arg2[%c0_1, %c0_2] : memref<1x32xf32, #tpu.memory_space<vmem>>, vector<1x32xf32>
    %2 = vector.broadcast %1 : vector<1x32xf32> to vector<8x32xf32>
    %3 = arith.mulf %0, %2 : vector<8x32xf32>
    %cst = arith.constant dense<0.000000e+00> : vector<8xf32>
    %4 = vector.multi_reduction <add>, %3, %cst [1] : vector<8x32xf32> to vector<8xf32>
    %5 = vector.shape_cast %4 : vector<8xf32> to vector<8x1xf32>
    %c0_3 = arith.constant 0 : index
    %6 = memref.load %arg3[%c0_3] : memref<1xf32, #tpu.memory_space<smem>>
    %7 = vector.broadcast %6 : f32 to vector<8x1xf32>
    %8 = arith.addf %5, %7 : vector<8x1xf32>
    %9 = tpu.transpose %8, [1, 0] : vector<8x1xf32> -> vector<1x8xf32>
    %c0_4 = arith.constant 0 : index
    %c0_5 = arith.constant 0 : index
    %10 = vector.load %arg4[%c0_4, %c0_5] : memref<1x8xf32, #tpu.memory_space<vmem>>, vector<1x8xf32>
    tpu.vector_store %arg4[%c0_4, %c0_5], %9 {strides = array<i32>} : memref<1x8xf32, #tpu.memory_space<vmem>>, vector<1x8xf32>,
    return
  }
  func.func @transform_0(%arg0: i32) -> (i32, i32) {
    %c0_i32 = arith.constant 0 : i32
    %c0_i32_0 = arith.constant 0 : i32
    return %arg0, %c0_i32 : i32, i32
  }
  func.func @transform_1(%arg0: i32) -> (i32, i32) {
    %c0_i32 = arith.constant 0 : i32
    %c0_i32_0 = arith.constant 0 : i32
    %c0_i32_1 = arith.constant 0 : i32
    return %c0_i32, %c0_i32_0 : i32, i32
  }
  func.func @transform_2(%arg0: i32) -> i32 {
    %c0_i32 = arith.constant 0 : i32
    %c0_i32_0 = arith.constant 0 : i32
    return %c0_i32 : i32
  }
  func.func @transform_3(%arg0: i32) -> (i32, i32) {
    %c0_i32 = arith.constant 0 : i32
    %c0_i32_0 = arith.constant 0 : i32
    return %c0_i32, %arg0 : i32, i32
  }
}

module attributes {stable_mosaic.version = 11 : i64} {
  func.func @linear_kernel(%arg0: i32, %arg1: memref<8x32xf32, #tpu.memory_space<vmem>>, %arg2: memref<1x32xf32, #tpu.memory_space<vmem>>, %arg3: memref<1xf32, #tpu.memory_space<smem>>, %arg4: memref<1x8xf32, #tpu.memory_space<vmem>>) attributes {dimension_semantics = [#tpu.dimension_semantics<parallel>], iteration_bounds = array<i64: 1>, scalar_prefetch = 0 : i64, scratch_operands = 0 : i64, tpu.core_type = #tpu.core_type<tc>, window_params = [{transform_indices = @transform_0, window_bounds = array<i64: 8, 32>}, {pipeline_mode = #tpu.pipeline_mode<synchronous>, transform_indices = @transform_1, window_bounds = array<i64: 1, 32>}, {transform_indices = @transform_2, window_bounds = array<i64: 1>}, {transform_indices = @transform_3, window_bounds = array<i64: 1, 8>}]} {
    %c0 = arith.constant 0 : index
    %c0_0 = arith.constant 0 : index
    %0 = vector.load %arg1[%c0, %c0_0] : memref<8x32xf32, #tpu.memory_space<vmem>>, vector<8x32xf32>
    %c0_1 = arith.constant 0 : index
    %c0_2 = arith.constant 0 : index
    %1 = vector.load %arg2[%c0_1, %c0_2] : memref<1x32xf32, #tpu.memory_space<vmem>>, vector<1x32xf32>
    %2 = vector.broadcast %1 : vector<1x32xf32> to vector<8x32xf32>
    %3 = arith.mulf %0, %2 : vector<8x32xf32>
    %cst = arith.constant dense<0.000000e+00> : vector<8xf32>
    %4 = vector.multi_reduction <add>, %3, %cst [1] : vector<8x32xf32> to vector<8xf32>
    %5 = vector.shape_cast %4 : vector<8xf32> to vector<8x1xf32>
    %c0_3 = arith.constant 0 : index
    %6 = memref.load %arg3[%c0_3] : memref<1xf32, #tpu.memory_space<smem>>
    %7 = vector.broadcast %6 : f32 to vector<8x1xf32>
    %8 = arith.addf %5, %7 : vector<8x1xf32>
    %9 = tpu.transpose %8, [1, 0] : vector<8x1xf32> -> vector<1x8xf32>
    %c0_4 = arith.constant 0 : index
    %c0_5 = arith.constant 0 : index
    %10 = vector.load %arg4[%c0_4, %c0_5] : memref<1x8xf32, #tpu.memory_space<vmem>>, vector<1x8xf32>
    tpu.vector_store %arg4[%c0_4, %c0_5], %9 {strides = array<i32>} : memref<1x8xf32, #tpu.memory_space<vmem>>, vector<1x8xf32>,
    return
  }
  func.func @transform_0(%arg0: i32) -> (i32, i32) {
    %c0_i32 = arith.constant 0 : i32
    %c0_i32_0 = arith.constant 0 : i32
    return %arg0, %c0_i32 : i32, i32
  }
  func.func @transform_1(%arg0: i32) -> (i32, i32) {
    %c0_i32 = arith.constant 0 : i32
    %c0_i32_0 = arith.constant 0 : i32
    %c0_i32_1 = arith.constant 0 : i32
    return %c0_i32, %c0_i32_0 : i32, i32
  }
  func.func @transform_2(%arg0: i32) -> i32 {
    %c0_i32 = arith.constant 0 : i32
    %c0_i32_0 = arith.constant 0 : i32
    return %c0_i32 : i32
  }
  func.func @transform_3(%arg0: i32) -> (i32, i32) {
    %c0_i32 = arith.constant 0 : i32
    %c0_i32_0 = arith.constant 0 : i32
    return %c0_i32, %arg0 : i32, i32
  }
}

</mosaic_0001>

<bundles_post_ra>
// kernel: tpu_custom_call.1
= control target key start
LH: loop header
LB: loop body
LE: loop exit
PB: predicated region body
PF: predicated region fallthrough
CT: control target
= control target key end

     0   :  { %s177_s12 = sld [smem:[#allocation0]]   ;;  %s199_s0 = inlined_call_operand.hbm [shape: f32[8,32], index: 0, kind: input, shape index: {}]   ;;  %s200_s1 = inlined_call_operand.vmem [shape: f32[1,32], index: 1, kind: input, shape index: {}]   ;;  %s201_s2 = inlined_call_operand.<no memory space> [shape: f32[1], index: 2, kind: input, shape index: {}]   ;;  %s202_s3 = inlined_call_operand.hbm [shape: f32[1,8], index: 3, kind: output, shape index: {}]  }
   0x1   :  { %9 = vsyncpa [#allocation4], 0 }
   0x2   :  { %10 = vsyncpa [#allocation5], 0  ;;  %s155_s17 = smov [#allocation3]   ;;  %s109_s22 = scalar_lea.hbm %s199_s0, 128 }
   0x3   :  { %s19_s18 = sshll.u32 %s155_s17, 4  ;;  %s20_s18 = int_to_ptr.vmem [resolvable:$true] %s19_s18 }
   0x6   :  { %s101_s13 = sshll.u32 %s177_s12, 7 }
   0x7   :  { %s17_s16 = scalar_lea.hbm %s199_s0, %s101_s13 }
   0x8   :  { %s107_s19 = scalar_lea.hbm %s17_s16, 128 }
   0x9   :  { %p108_p0 = scmp.ne.s32.totalorder %s17_s16, %s107_s19  ;;  %p111_p1 = scmp.lt.s32.totalorder %s109_s22, %s107_s19 }
   0xb   :  { %p113_p2 = pnand %p111_p1, %p108_p0 }
   0xd   :  { %116 = shalt.err (!%p113_p2)
}
   0xe   :  { %s117_s23 = scalar_lea.vmem %s20_s18, 128  ;;  %p122_p4 = scmp.lt.s32.totalorder %s20_s18, %s20_s18 }
   0xf   :  { %p118_p3 = scmp.ne.s32.totalorder %s20_s18, %s117_s23  ;;  %p123_p5 = scmp.lt.s32.totalorder %s117_s23, %s117_s23 }
  0x11   :  { %p124_p6 = por %p123_p5, %p122_p4 }
  0x13   :  { %p125_p7 = pnand %p124_p6, %p118_p3 }
  0x15   :  { %128 = shalt.err (!%p125_p7)
}
  0x16   :  { %22 = dma.hbm_to_vmem [thread:$0]  %s17_s16, 128, %s20_s18, [#allocation4]  }
  0x17   :  { %151 = dma.done.wait [#allocation4], 128  }
  0x18   :  { %152 = vsyncadd [#allocation4], 4294967168  ;;  %v30_v0 = vld [vmem:[#allocation3] sm:$0xff]  ;;  %vm39_vm0 = vcmask 261120   ;;  %v44_v4 = vstv %s201_s2  ;;  %s103_s27 = sshll.u32 %s177_s12, 4  ;;  %s156_s28 = smov [#allocation6]  }
  0x19   :  { %v102_v1 = vld [vmem:[%s200_s1] ss:$0 sm:$0xff]  ;;  %s88_s29 = sshll.u32 %s156_s28, 4  ;;  %vm78_vm1 = vcmask 57344   ;;  %s86_s5 = scalar_lea.hbm %s202_s3, %s103_s27  ;;  %s89_s29 = int_to_ptr.vmem [resolvable:$true] %s88_s29 }
  0x1a   :  { %v38_v2 = vmul.f32 %v102_v1, %v30_v0  ;;  %s129_s1 = scalar_lea.vmem %s89_s29, 16  ;;  %s133_s6 = scalar_lea.vmem %s89_s29, 32 }
  0x1b   :  { %p130_p8 = scmp.ne.s32.totalorder %s89_s29, %s129_s1  ;;  %p134_p9 = scmp.lt.s32.totalorder %s89_s29, %s89_s29 }
  0x1c   :  { %v40_v3 = vsel %vm39_vm0, %v38_v2, 0.0  ;;  %p135_p10 = scmp.lt.s32.totalorder %s133_s6, %s129_s1 }
  0x1d   :  { %41 = vadd.xlane.f32.xlu0 %v40_v3 }
  0x1e   :  { %p136_p11 = por %p135_p10, %p134_p9 }
  0x20   :  { %p137_p12 = pnand %p136_p11, %p130_p8 }
  0xa6   :  { %v42_v5 = vpop.xlane.xlu0 %41 }
  0xa7   :  { %v45_v6 = vadd.f32 %v44_v4, %v42_v5 }
  0xa9   :  { %46 = vxpose.xlu0.b32.start.end [1/1] (short) (narrow) %v45_v6, 8 }
 0x125   :  { %v62_v7 = vpop.trf.xlu0 }
 0x126   :  { %79 = vst.msk [vmem:[#allocation6] sm:$0x1] %vm78_vm1, %v62_v7 }
 0x127   :  { %140 = shalt.err (!%p137_p12)
}
 0x128   :  { %s141_s2 = scalar_lea.hbm %s86_s5, 16  ;;  %s143_s9 = scalar_lea.hbm %s202_s3, 16 }
 0x129   :  { %p142_p13 = scmp.ne.s32.totalorder %s86_s5, %s141_s2  ;;  %p145_p0 = scmp.lt.s32.totalorder %s143_s9, %s141_s2 }
 0x12b   :  { %p147_p1 = pnand %p145_p0, %p142_p13 }
 0x12d   :  { %150 = shalt.err (!%p147_p1)
}
 0x12e   :  { %91 = dma.vmem_to_hbm [thread:$0]  %s89_s29, 16, %s86_s5, [#allocation5]  }
 0x12f   :  { %153 = dma.done.wait [#allocation5], 16  }
 0x130   :  { %154 = vsyncadd [#allocation5], 4294967280 }
 0x131   :  { %95 = vsyncpa [#allocation4], 1 }
 0x132   :  { %96 = vsyncpa [#allocation5], 1 }

// kernel: tpu_custom_call.1
= control target key start
LH: loop header
LB: loop body
LE: loop exit
PB: predicated region body
PF: predicated region fallthrough
CT: control target
= control target key end

     0   :  { %9 = vsyncpa [#allocation4], 0  ;;  %s175_s0 = inlined_call_operand.hbm [shape: f32[8,32], index: 0, kind: input, shape index: {}]   ;;  %s176_s1 = inlined_call_operand.vmem [shape: f32[1,32], index: 1, kind: input, shape index: {}]   ;;  %s177_s2 = inlined_call_operand.<no memory space> [shape: f32[1], index: 2, kind: input, shape index: {}]   ;;  %s178_s3 = inlined_call_operand.hbm [shape: f32[1,8], index: 3, kind: output, shape index: {}]  }
   0x1   :  { %10 = vsyncpa [#allocation5], 0  ;;  %s141_s12 = smov [#allocation3]  }
   0x2   :  { %s17_s13 = sshll.u32 %s141_s12, 4  ;;  %s18_s13 = int_to_ptr.vmem [resolvable:$true] %s17_s13 }
   0x3   :  { %s105_s14 = scalar_lea.vmem %s18_s13, 128  ;;  %p110_p1 = scmp.lt.s32.totalorder %s18_s13, %s18_s13 }
   0x4   :  { %p106_p0 = scmp.ne.s32.totalorder %s18_s13, %s105_s14  ;;  %p111_p2 = scmp.lt.s32.totalorder %s105_s14, %s105_s14 }
   0x6   :  { %p112_p3 = por %p111_p2, %p110_p1 }
   0x8   :  { %p113_p4 = pnand %p112_p3, %p106_p0 }
   0xa   :  { %116 = shalt.err (!%p113_p4)
}
   0xb   :  { %20 = dma.hbm_to_vmem [thread:$0]  %s175_s0, 128, %s18_s13, [#allocation4]  }
   0xc   :  { %137 = dma.done.wait [#allocation4], 128  }
   0xd   :  { %138 = vsyncadd [#allocation4], 4294967168  ;;  %v28_v0 = vld [vmem:[#allocation3] sm:$0xff]  ;;  %vm37_vm0 = vcmask 261120   ;;  %v42_v4 = vstv %s177_s2  ;;  %s142_s21 = smov [#allocation6]   ;;  %vm76_vm1 = vcmask 57344  }
   0xe   :  { %v93_v1 = vld [vmem:[%s176_s1] ss:$0 sm:$0xff]  ;;  %s84_s0 = sshll.u32 %s142_s21, 4  ;;  %s85_s0 = int_to_ptr.vmem [resolvable:$true] %s84_s0 }
   0xf   :  { %v36_v2 = vmul.f32 %v93_v1, %v28_v0  ;;  %s117_s22 = scalar_lea.vmem %s85_s0, 16  ;;  %s121_s1 = scalar_lea.vmem %s85_s0, 32 }
  0x10   :  { %p118_p5 = scmp.ne.s32.totalorder %s85_s0, %s117_s22  ;;  %p122_p6 = scmp.lt.s32.totalorder %s85_s0, %s85_s0 }
  0x11   :  { %v38_v3 = vsel %vm37_vm0, %v36_v2, 0.0  ;;  %p123_p7 = scmp.lt.s32.totalorder %s121_s1, %s117_s22 }
  0x12   :  { %39 = vadd.xlane.f32.xlu0 %v38_v3 }
  0x13   :  { %p124_p8 = por %p123_p7, %p122_p6 }
  0x15   :  { %p125_p9 = pnand %p124_p8, %p118_p5 }
  0x9b   :  { %v40_v5 = vpop.xlane.xlu0 %39 }
  0x9c   :  { %v43_v6 = vadd.f32 %v42_v4, %v40_v5 }
  0x9e   :  { %44 = vxpose.xlu0.b32.start.end [1/1] (short) (narrow) %v43_v6, 8 }
 0x11a   :  { %v60_v7 = vpop.trf.xlu0 }
 0x11b   :  { %77 = vst.msk [vmem:[#allocation6] sm:$0x1] %vm76_vm1, %v60_v7 }
 0x11c   :  { %128 = shalt.err (!%p125_p9)
}
 0x11d   :  { %87 = dma.vmem_to_hbm [thread:$0]  %s85_s0, 16, %s178_s3, [#allocation5]  }
 0x11e   :  { %139 = dma.done.wait [#allocation5], 16  }
 0x11f   :  { %140 = vsyncadd [#allocation5], 4294967280 }
 0x120   :  { %91 = vsyncpa [#allocation4], 1 }
 0x121   :  { %92 = vsyncpa [#allocation5], 1 }

</bundles_post_ra>
